<compile_context>
chip_gen: v6e
topology: v6e:2x2x1
jax: 0.10.0
libtpu: 0.0.40
codegen_flags: <defaults>
</compile_context>

<pallas_src>
import math
import functools

import jax
import jax.numpy as jnp
from jax import lax
from jax.experimental import pallas as pl
from jax.experimental.pallas import tpu as pltpu


_VMEM_BUDGET = 40 * 1024 * 1024   # conservative per-call working-set target
_VMEM_LIMIT = 48 * 1024 * 1024    # explicit scoped-VMEM limit (v7x-safe)


def _round_up(x, m):
    return (x + m - 1) // m * m


# ----------------------------------------------------------------------------
# Tiled dense kernel:  out = x @ W + b   (bf16 MXU operands, f32 accumulate).
# ----------------------------------------------------------------------------
def _linear_kernel(x_ref, w_ref, b_ref, o_ref):
    x = x_ref[...].astype(jnp.bfloat16)           # no-op when x is already bf16
    acc = jnp.dot(x, w_ref[...], preferred_element_type=jnp.float32)
    o_ref[...] = (acc + b_ref[...]).astype(o_ref.dtype)


def linear(x, w_bf16, b, out_dtype=jnp.float32):
    """x: (M, K), w_bf16: (K, N) bf16 (pre-transposed), b: (N,) f32 -> (M, N)."""
    M, K = x.shape
    N = w_bf16.shape[1]
    xb = jnp.dtype(x.dtype).itemsize
    ob = jnp.dtype(out_dtype).itemsize
    # Largest M-tile whose double-buffered footprint fits the VMEM budget.
    TM = min(_round_up(M, 8), 128)
    for cand in (1024, 512, 256):
        if cand <= M and (2 * cand * K * xb + 2 * cand * N * ob
                          + 2 * K * N * 2 + 2 * N * 4) <= _VMEM_BUDGET:
            TM = cand
            break
    Mp = _round_up(M, TM)
    if Mp != M:
        x = jnp.pad(x, ((0, Mp - M), (0, 0)))
    out = pl.pallas_call(
        _linear_kernel,
        out_shape=jax.ShapeDtypeStruct((Mp, N), out_dtype),
        grid=(Mp // TM,),
        in_specs=[pl.BlockSpec((TM, K), lambda i: (i, 0)),
                  pl.BlockSpec((K, N), lambda i: (0, 0)),
                  pl.BlockSpec((1, N), lambda i: (0, 0))],
        out_specs=pl.BlockSpec((TM, N), lambda i: (i, 0)),
        compiler_params=pltpu.CompilerParams(
            dimension_semantics=("parallel",),
            vmem_limit_bytes=_VMEM_LIMIT),
    )(x, w_bf16, b.reshape(1, N))
    return out[:M] if Mp != M else out


# ----------------------------------------------------------------------------
# LSTM recurrence (input projection already hoisted into `xw`, bf16).
# grid = (batch_blocks, time_chunks); h/c carried in VMEM scratch across time.
# Gate order (after prepare_params reorder): i, f, o, g  ->  one sigmoid over
# a contiguous (BB, 3H) slab + one tanh on the serial critical path.
# ----------------------------------------------------------------------------
def _lstm_recurrence_kernel(xw_ref, whh_ref, y_ref, h_sc, c_sc, *, hidden, t_chunk):
    H = hidden

    @pl.when(pl.program_id(1) == 0)     # first time chunk -> zero initial state
    def _():
        h_sc[...] = jnp.zeros_like(h_sc)
        c_sc[...] = jnp.zeros_like(c_sc)

    # TODO(synk): for H <= ~256 the h @ Whh could keep Whh resident in the MXU
    # staging registers via pltpu.matmul_push_rhs/acc_lhs/pop; plain jnp.dot
    # kept here for portability.
    whh = whh_ref[...]                  # (H, 4H) bf16, resident across the loop

    def step(t, _):
        h = h_sc[...]
        c = c_sc[...]
        # Only the small h @ Whh stays on the serial critical path; bias and
        # input projection are folded into the precomputed bf16 xw.
        gates = xw_ref[t].astype(jnp.float32) + jnp.dot(
            h.astype(jnp.bfloat16), whh, preferred_element_type=jnp.float32)
        sig = jax.nn.sigmoid(gates[:, 0:3 * H])          # i, f, o in one EUP slab
        g_g = jnp.tanh(gates[:, 3 * H:4 * H])
        i_g = sig[:, 0:H]
        f_g = sig[:, H:2 * H]
        o_g = sig[:, 2 * H:3 * H]
        c_new = f_g * c + i_g * g_g
        h_new = o_g * jnp.tanh(c_new)
        h_sc[...] = h_new
        c_sc[...] = c_new
        y_ref[t] = h_new.astype(y_ref.dtype)
        return 0

    lax.fori_loop(0, t_chunk, step, 0, unroll=4)


def _pick_batch_block(B):
    # Split the batch across the "parallel" grid axis only on multi-TensorCore
    # parts (v7x); on single-TC v5e/v6e a split just serializes the grid and
    # halves the rows fed per Whh weight stream.
    try:
        kind = jax.devices()[0].device_kind.lower()
        multi_tc = "v7" in kind
    except Exception:
        multi_tc = False
    if multi_tc and B % 16 == 0:
        return B // 2
    return B


def lstm_recurrence(xw, whh_t_bf16):
    """xw: (T, B, 4H) bf16 time-major pre-activations -> (T, B, H) bf16 outputs."""
    T, B, G = xw.shape
    H = whh_t_bf16.shape[0]
    BB = _pick_batch_block(B)

    # Time-chunk size: largest <=128 chunk whose pipelined footprint fits VMEM
    # (bf16 xw/y streams already halve the budget pressure vs f32).
    TC = 128
    def _need(tc):
        return (2 * tc * BB * G * 2 + 2 * H * G * 2
                + 2 * tc * BB * H * 2 + 2 * BB * H * 4)
    while TC > 8 and _need(TC) > _VMEM_BUDGET:
        TC //= 2
    TC = min(TC, _round_up(T, 8))
    Tp = _round_up(T, TC)
    if Tp != T:
        xw = jnp.pad(xw, ((0, Tp - T), (0, 0), (0, 0)))

    kernel = functools.partial(_lstm_recurrence_kernel, hidden=H, t_chunk=TC)
    y = pl.pallas_call(
        kernel,
        out_shape=jax.ShapeDtypeStruct((Tp, B, H), jnp.bfloat16),
        grid=(B // BB, Tp // TC),
        in_specs=[pl.BlockSpec((TC, BB, G), lambda b, t: (t, b, 0)),
                  pl.BlockSpec((H, G), lambda b, t: (0, 0))],
        out_specs=pl.BlockSpec((TC, BB, H), lambda b, t: (t, b, 0)),
        scratch_shapes=[pltpu.VMEM((BB, H), jnp.float32),
                        pltpu.VMEM((BB, H), jnp.float32)],
        compiler_params=pltpu.CompilerParams(
            dimension_semantics=("parallel", "arbitrary"),
            vmem_limit_bytes=_VMEM_LIMIT),
    )(xw, whh_t_bf16)
    return y[:T] if Tp != T else y


# ----------------------------------------------------------------------------
# Multi-head self-attention fused with the final vocab projection.
# One program per sequence.  Fused QKV matmul, flash-style online softmax over
# KV chunks (no (T, T) materialization), Wo folded into the per-head loop,
# vocab lane dim padded to 128 for lane-dense stores.
# ----------------------------------------------------------------------------
def _mha_out_kernel(x_ref, wqkv_ref, bqkv_ref, wo_ref, bo_ref, wout_ref, bout_ref,
                    o_ref, *, num_heads, head_dim, kv_chunk):
    T = x_ref.shape[1]
    E = num_heads * head_dim
    x = x_ref[0].astype(jnp.bfloat16)                                   # (T, E)

    # Single fused projection pass: columns [q | k | v].
    qkv = jnp.dot(x, wqkv_ref[...], preferred_element_type=jnp.float32) + bqkv_ref[...]
    scale = 1.0 / math.sqrt(head_dim)
    wo = wo_ref[...]                                                    # (E, E) bf16

    contract_last = (((1,), (1,)), ((), ()))     # q @ k^T without materializing k.T
    attn = jnp.zeros((T, E), jnp.float32)
    for h in range(num_heads):
        q0 = h * head_dim
        qh = (qkv[:, q0:q0 + head_dim] * scale).astype(jnp.bfloat16)
        # Online softmax over KV chunks (static bounds -> unrolled in trace).
        m_i = jnp.full((T, 1), -1e30, jnp.float32)
        l_i = jnp.zeros((T, 1), jnp.float32)
        acc = jnp.zeros((T, head_dim), jnp.float32)
        for kv0 in range(0, T, kv_chunk):
            kv1 = min(kv0 + kv_chunk, T)
            kh = qkv[kv0:kv1, E + q0:E + q0 + head_dim].astype(jnp.bfloat16)
            vh = qkv[kv0:kv1, 2 * E + q0:2 * E + q0 + head_dim].astype(jnp.bfloat16)
            s = lax.dot_general(qh, kh, contract_last,
                                preferred_element_type=jnp.float32)     # (T, chunk)
            m_new = jnp.maximum(m_i, jnp.max(s, axis=-1, keepdims=True))
            alpha = jnp.exp(m_i - m_new)
            p = jnp.exp(s - m_new)
            l_i = alpha * l_i + jnp.sum(p, axis=-1, keepdims=True)
            acc = alpha * acc + jnp.dot(p.astype(jnp.bfloat16), vh,
                                        preferred_element_type=jnp.float32)
            m_i = m_new
        ctx_h = acc * pl.reciprocal(l_i, approx=True)                   # (T, hd)
        # Fold Wo into the head loop: lane-dense (T, E) accumulation, no
        # masked partial-lane context stores, identical total FLOPs.
        attn = attn + jnp.dot(ctx_h.astype(jnp.bfloat16), wo[q0:q0 + head_dim, :],
                              preferred_element_type=jnp.float32)

    attn = attn + bo_ref[...]
    logits = (jnp.dot(attn.astype(jnp.bfloat16), wout_ref[...],
                      preferred_element_type=jnp.float32) + bout_ref[...])
    o_ref[0] = logits.astype(o_ref.dtype)


def attention_and_output(x, p, num_heads):
    """x: (B, T, E) bf16. Returns fused attention + output-layer logits (B, T, Vpad)."""
    B, T, E = x.shape
    hd = E // num_heads
    Vp = p["wout_p"].shape[1]
    kv_chunk = min(T, 512)
    kernel = functools.partial(_mha_out_kernel, num_heads=num_heads,
                               head_dim=hd, kv_chunk=kv_chunk)
    full = lambda b: (0, 0)
    return pl.pallas_call(
        kernel,
        out_shape=jax.ShapeDtypeStruct((B, T, Vp), jnp.float32),
        grid=(B,),
        in_specs=[pl.BlockSpec((1, T, E), lambda b: (b, 0, 0)),
                  pl.BlockSpec((E, 3 * E), full), pl.BlockSpec((1, 3 * E), full),
                  pl.BlockSpec((E, E), full), pl.BlockSpec((1, E), full),
                  pl.BlockSpec((E, Vp), full), pl.BlockSpec((1, Vp), full)],
        out_specs=pl.BlockSpec((1, T, Vp), lambda b: (b, 0, 0)),
        compiler_params=pltpu.CompilerParams(
            dimension_semantics=("parallel",),
            vmem_limit_bytes=_VMEM_LIMIT),
    )(x, p["wqkv"], p["bqkv"], p["wo"], p["bo"], p["wout_p"], p["bout_p"])


# ----------------------------------------------------------------------------
# One-time parameter preparation (transposes, gate reorder, bf16 casts,
# lane padding, wav2vec/layer-0 pre-composition).
# ----------------------------------------------------------------------------
def _reorder_gates(m):
    """PyTorch LSTM row-blocks (i, f, g, o) -> (i, f, o, g) along axis 0."""
    H = m.shape[0] // 4
    return jnp.concatenate([m[:2 * H], m[3 * H:4 * H], m[2 * H:3 * H]], axis=0)


def prepare_params(raw, lstm_raw, vocab_size):
    E = raw["out_proj_w"].shape[0]
    Vp = max(128, _round_up(vocab_size, 128))

    wout = raw["out_w"].T                                        # (E, V)
    wout_p = jnp.pad(wout, ((0, 0), (0, Vp - vocab_size)))
    bout_p = jnp.pad(raw["out_b"], (0, Vp - vocab_size))

    params = {
        # Fused QKV projection: columns [q | k | v] (natural in_proj transpose).
        "wqkv": raw["in_proj_w"].T.astype(jnp.bfloat16),         # (E, 3E)
        "bqkv": raw["in_proj_b"].reshape(1, 3 * E),
        "wo": raw["out_proj_w"].T.astype(jnp.bfloat16),          # (E, E)
        "bo": raw["out_proj_b"].reshape(1, E),
        "wout_p": wout_p.astype(jnp.bfloat16),
        "bout_p": bout_p.reshape(1, Vp),
    }

    wihs, whhs, biases = [], [], []
    for li, (wih, whh, b_ih, b_hh) in enumerate(lstm_raw):
        wih_t = _reorder_gates(wih).T                            # (Din, 4H), (i,f,o,g)
        whh_t = _reorder_gates(whh).T                            # (H, 4H)
        bias = _reorder_gates(b_ih + b_hh)                       # (4H,) f32
        if li == 0:
            # Pre-compose the frozen wav2vec stand-in projection with the
            # layer-0 LSTM input projection: frames @ (W2v @ Wih0) + b.
            bias = raw["w2v_b"] @ wih_t + bias
            wih_t = raw["w2v_w"] @ wih_t                         # (frame_len, 4H)
        wihs.append(wih_t.astype(jnp.bfloat16))
        whhs.append(whh_t.astype(jnp.bfloat16))
        biases.append(bias)
    lstm_params = {"wih": wihs, "whh": whhs, "bias": biases}
    return params, lstm_params


# ----------------------------------------------------------------------------
# Full CustomSTTModel forward (glue in plain JAX, hot paths in Pallas).
# ----------------------------------------------------------------------------
def custom_stt_forward(input_values, input_lengths, params, lstm_params,
                       *, num_heads, frame_len, vocab_size):
    B, L = input_values.shape
    T = L // frame_len
    H = lstm_params["whh"][0].shape[0]

    # --- sort batch by input_lengths descending (torch.sort(descending=True));
    #     the PyTorch reference keeps the sorted order in its output, so do we.
    #     Sorting the raw inputs is equivalent to sorting the frozen features.
    sorted_indices = jnp.argsort(-input_lengths, stable=True)
    sorted_inputs = input_values[sorted_indices]

    # --- frozen wav2vec feature extraction (stand-in; pre-composed with the
    #     layer-0 LSTM input projection -> the (B, T, D) features never hit HBM).
    frames = sorted_inputs[:, :T * frame_len].reshape(B, T, frame_len)
    x = jnp.transpose(frames, (1, 0, 2)).reshape(T * B, frame_len)   # time-major

    # --- multi-layer LSTM (pack/pad is a no-op: processed_lengths all == T).
    #     Input projection hoisted as one big tiled MXU matmul per layer (bf16
    #     activation stream), then the time-chunked recurrence carries h/c.
    y = None
    for wih_t, whh_t, b in zip(lstm_params["wih"], lstm_params["whh"],
                               lstm_params["bias"]):
        xw = linear(x, wih_t, b, out_dtype=jnp.bfloat16).reshape(T, B, 4 * H)
        y = lstm_recurrence(xw, whh_t)                           # (T, B, H) bf16
        x = y.reshape(T * B, H)

    # TODO(synk): this (T,B,H)->(B,T,H) transpose could be folded into the last
    # recurrence's out_specs (batch-major store); kept as one bf16 XLA transpose.
    lstm_out = jnp.transpose(y, (1, 0, 2))                       # (B, T, H) bf16

    # --- fused multi-head self-attention + output projection to vocab ---
    logits_p = attention_and_output(lstm_out, params, num_heads)
    return logits_p[..., :vocab_size]


# ----------------------------------------------------------------------------
if __name__ == "__main__":
    # small deterministic config
    B = 2            # batch
    frame_len = 4    # stand-in wav2vec downsampling factor
    T = 8            # processed sequence length
    D = 32           # wav2vec.config.hidden_size (feature_size)
    H = 32           # lstm_hidden_size
    L_LAYERS = 2     # lstm_layers
    NH = 4           # attention_heads
    V = 16           # wav2vec.config.vocab_size
    L = T * frame_len

    key = jax.random.PRNGKey(0)
    keys = iter(jax.random.split(key, 32))

    def u(shape, scale):
        return jax.random.uniform(next(keys), shape, jnp.float32, -scale, scale)

    s_h = 1.0 / math.sqrt(H)
    s_f = 1.0 / math.sqrt(frame_len)

    raw_params = {
        "w2v_w": u((frame_len, D), s_f),        # stand-in feature projection
        "w2v_b": u((D,), s_f),
        "in_proj_w": u((3 * H, H), s_h),        # MHA in_proj (PyTorch layout)
        "in_proj_b": u((3 * H,), s_h),
        "out_proj_w": u((H, H), s_h),
        "out_proj_b": u((H,), s_h),
        "out_w": u((V, H), s_h),                # nn.Linear(H, V) PyTorch layout
        "out_b": u((V,), s_h),
    }

    raw_lstm = []
    for layer in range(L_LAYERS):
        din = D if layer == 0 else H
        raw_lstm.append((u((4 * H, din), s_h),  # weight_ih_l{k}
                         u((4 * H, H), s_h),    # weight_hh_l{k}
                         u((4 * H,), s_h),      # bias_ih_l{k}
                         u((4 * H,), s_h)))     # bias_hh_l{k}

    params, lstm_params = prepare_params(raw_params, raw_lstm, V)

    input_values = jax.random.normal(next(keys), (B, L), jnp.float32)
    input_lengths = jnp.array([20, 32], dtype=jnp.int32)

    out = custom_stt_forward(input_values, input_lengths, params, lstm_params,
                             num_heads=NH, frame_len=frame_len, vocab_size=V)
    out = jax.block_until_ready(out)

    assert out.shape == (B, T, V), out.shape
    assert jnp.all(jnp.isfinite(out))
    print("KERNEL_OK")
</pallas_src>

<mosaic_0001>
module attributes {stable_mosaic.version = 11 : i64} {
  func.func @_linear_kernel(%arg0: i32, %arg1: memref<16x4xf32, #tpu.memory_space<vmem>>, %arg2: memref<4x128xbf16, #tpu.memory_space<vmem>>, %arg3: memref<1x128xf32, #tpu.memory_space<vmem>>, %arg4: memref<16x128xbf16, #tpu.memory_space<vmem>>) attributes {dimension_semantics = [#tpu.dimension_semantics<parallel>], iteration_bounds = array<i64: 1>, scalar_prefetch = 0 : i64, scratch_operands = 0 : i64, tpu.core_type = #tpu.core_type<tc>, window_params = [{transform_indices = @transform_0, window_bounds = array<i64: 16, 4>}, {pipeline_mode = #tpu.pipeline_mode<synchronous>, transform_indices = @transform_1, window_bounds = array<i64: 4, 128>}, {pipeline_mode = #tpu.pipeline_mode<synchronous>, transform_indices = @transform_2, window_bounds = array<i64: 1, 128>}, {transform_indices = @transform_3, window_bounds = array<i64: 16, 128>}]} {
    %c0 = arith.constant 0 : index
    %c0_0 = arith.constant 0 : index
    %0 = vector.load %arg1[%c0, %c0_0] : memref<16x4xf32, #tpu.memory_space<vmem>>, vector<16x4xf32>
    %1 = arith.truncf %0 : vector<16x4xf32> to vector<16x4xbf16>
    %c0_1 = arith.constant 0 : index
    %c0_2 = arith.constant 0 : index
    %2 = vector.load %arg2[%c0_1, %c0_2] : memref<4x128xbf16, #tpu.memory_space<vmem>>, vector<4x128xbf16>
    %cst = arith.constant dense<0.000000e+00> : vector<16x128xf32>
    %3 = tpu.matmul %1, %2, %cst {dimension_numbers = #tpu.dot_dimension_numbers<[1], [0], [0], [1], [0, 0, 1, 1], [], []>} : vector<16x4xbf16>, vector<4x128xbf16>, vector<16x128xf32> -> vector<16x128xf32>
    %c0_3 = arith.constant 0 : index
    %c0_4 = arith.constant 0 : index
    %4 = vector.load %arg3[%c0_3, %c0_4] : memref<1x128xf32, #tpu.memory_space<vmem>>, vector<1x128xf32>
    %5 = vector.broadcast %4 : vector<1x128xf32> to vector<16x128xf32>
    %6 = arith.addf %3, %5 : vector<16x128xf32>
    %7 = arith.truncf %6 : vector<16x128xf32> to vector<16x128xbf16>
    %c0_5 = arith.constant 0 : index
    %c0_6 = arith.constant 0 : index
    %8 = vector.load %arg4[%c0_5, %c0_6] : memref<16x128xbf16, #tpu.memory_space<vmem>>, vector<16x128xbf16>
    tpu.vector_store %arg4[%c0_5, %c0_6], %7 {strides = array<i32>} : memref<16x128xbf16, #tpu.memory_space<vmem>>, vector<16x128xbf16>,
    return
  }
  func.func @transform_0(%arg0: i32) -> (i32, i32) {
    %c0_i32 = arith.constant 0 : i32
    %c0_i32_0 = arith.constant 0 : i32
    return %arg0, %c0_i32 : i32, i32
  }
  func.func @transform_1(%arg0: i32) -> (i32, i32) {
    %c0_i32 = arith.constant 0 : i32
    %c0_i32_0 = arith.constant 0 : i32
    %c0_i32_1 = arith.constant 0 : i32
    return %c0_i32, %c0_i32_0 : i32, i32
  }
  func.func @transform_2(%arg0: i32) -> (i32, i32) {
    %c0_i32 = arith.constant 0 : i32
    %c0_i32_0 = arith.constant 0 : i32
    %c0_i32_1 = arith.constant 0 : i32
    return %c0_i32, %c0_i32_0 : i32, i32
  }
  func.func @transform_3(%arg0: i32) -> (i32, i32) {
    %c0_i32 = arith.constant 0 : i32
    %c0_i32_0 = arith.constant 0 : i32
    return %arg0, %c0_i32 : i32, i32
  }
}

</mosaic_0001>

<bundles_post_ra>
// kernel: tpu_custom_call.1
= control target key start
LH: loop header
LB: loop body
LE: loop exit
PB: predicated region body
PF: predicated region fallthrough
CT: control target
= control target key end

     0   :  { %vm31_vm0 = vcmask 1041408   ;;  %v148_v2 = vmov 0.0   ;;  %vm149_vm1 = vmmov 0   ;;  %vm27_vm2 = vcmask 31744   ;;  %s188_s0 = inlined_call_operand.vmem [shape: f32[16,4], index: 0, kind: input, shape index: {}]   ;;  %s189_s1 = inlined_call_operand.vmem [shape: bf16[4,128], index: 1, kind: input, shape index: {}]   ;;  %s190_s2 = inlined_call_operand.vmem [shape: f32[1,128], index: 2, kind: input, shape index: {}]   ;;  %s191_s3 = inlined_call_operand.hbm [shape: bf16[16,128], index: 3, kind: output, shape index: {}]  }
   0x1   :  { %v19_v0 = vld [vmem:[%s189_s1] sm:$0x3]  ;;  %115 = vmatprep.subr.bf16.mxu0 %v148_v2  ;;  %117 = vmatprep.mubr.msk.bf16.mxu0 %vm149_vm1, %v148_v2  ;;  %v17_v4 = vld [vmem:[%s188_s0 + $0x8] sm:$0xff] }
   0x2   :  { %v16_v1 = vld [vmem:[%s188_s0] sm:$0xff]  ;;  %v33_v3 = vsel %vm31_vm0, %v19_v0, 0 }
   0x3   :  { %116 = vmatpush3.bf16.msra.mxu0 %v33_v3  ;;  %v18_v5 = vpack.c.bf16 %v17_v4, %v16_v1 }
   0x4   :  { %8 = vsyncpa [#allocation3], 0  ;;  %v102_v7 = vld [vmem:[%s190_s2] ss:$0 sm:$0xff]  ;;  %s150_s19 = smov [#allocation2]  }
   0x5   :  { %s91_s20 = sshll.u32 %s150_s19, 4  ;;  %s92_s20 = int_to_ptr.vmem [resolvable:$true] %s91_s20 }
   0x6   :  { %118 = vmatmul.mubr.msk.bf16.vlgmr.msra.gmra.mxu0 %vm27_vm2, %v18_v5  ;;  %s126_s0 = scalar_lea.vmem %s92_s20, 128  ;;  %p131_p1 = scmp.lt.s32.totalorder %s92_s20, %s92_s20 }
   0x7   :  { %p127_p0 = scmp.ne.s32.totalorder %s92_s20, %s126_s0  ;;  %p132_p2 = scmp.lt.s32.totalorder %s126_s0, %s126_s0 }
   0x9   :  { %p133_p3 = por %p132_p2, %p131_p1 }
   0xb   :  { %p134_p4 = pnand %p133_p3, %p127_p0 }
  0xc6   :  { %v69_v6 = vpop.f32.mrf.mxu0 }
  0xc7   :  { %v70_v10 = vadd.f32 %v102_v7, %v69_v6 }
  0xc8   :  { %v119_v8 = vpop.f32.mrf.mxu0 }
  0xca   :  { %v72_v9 = vpop.f32.mrf.mxu0 }
  0xcb   :  { %v73_v11 = vadd.f32 %v102_v7, %v72_v9 }
  0xcc   :  { %v120_v12 = vpop.f32.mrf.mxu0 }
  0xcd   :  { %v111_v13 = vpack.c.bf16 %v73_v11, %v70_v10 }
  0xcf   :  { %112 = vst [vmem:[#allocation2] sm:$0xff] %v111_v13  }
  0xd0   :  { %137 = shalt.err (!%p134_p4)
}
  0xd1   :  { %s151_s21 = smov 64   ;;  %s152_s22 = smov 4  }
  0xd2   :  { %97 = dma.vmem_to_hbm [thread:$0]  %s92_s20, 128, %s191_s3, [#allocation3], %s151_s21, %s151_s21, %s152_s22  }
  0xd3   :  { %146 = dma.done.wait [#allocation3], 128  }
  0xd4   :  { %147 = vsyncadd [#allocation3], 4294967168 }
  0xd5   :  { %101 = vsyncpa [#allocation3], 1 }

</bundles_post_ra>
